<compile_context>
chip_gen: v5e
topology: v5e:2x2
jax: 0.10.0
libtpu: 0.0.40
codegen_flags: <defaults>
</compile_context>

<pallas_src>
import functools

import jax
import jax.numpy as jnp
from jax.experimental import pallas as pl
from jax.experimental.pallas import tpu as pltpu


def _coref_mrl_kernel(margin, lambda_w, m_true, k_neg, n_blk,
                      span_ref, invlen_ref, valid_ref, hx_ref, attrib_ref,
                      ww_ref, loss_ref, ws_ref, acc_ref):
    f32 = jnp.float32
    step = pl.program_id(1)
    n_steps = pl.num_programs(1)
    t_tile = hx_ref.shape[0]

    @pl.when(step == 0)
    def _init():
        acc_ref[...] = jnp.zeros_like(acc_ref)

    # Global token ids covered by this tile.
    tok = step * t_tile + jax.lax.broadcasted_iota(jnp.int32, (1, t_tile), 1)

    # One fused 0/1 mask over ALL stacked spans of this positive block:
    # row blocks = [referent | pos ctx | entity | ctx | neg_0 .. neg_{K-1}], each N_blk rows.
    s = span_ref[:, 0:1]
    e = span_ref[:, 1:2]
    mask = ((tok >= s) & (tok < e)).astype(hx_ref.dtype)       # (G*N_blk, t_tile)

    # Single MXU matmul + single accumulator RMW per token tile.
    acc_ref[...] += jnp.dot(mask, hx_ref[...], preferred_element_type=f32)

    @pl.when(step == n_steps - 1)
    def _finalize():
        nb = n_blk
        # Exact span means (inverse lengths precomputed exactly in the wrapper).
        means = acc_ref[...] * invlen_ref[...]                 # (G*N_blk, H_pad)

        head = means[0 * nb:1 * nb] + attrib_ref[...]          # SimilarityER head
        pos_mean = means[1 * nb:2 * nb]
        ent_mean = means[2 * nb:3 * nb]
        ctx_mean = means[3 * nb:4 * nb]

        # w_model: bilinear gate  ws = sigmoid( (ent_mean @ Ww) . ctx_mean )
        gated = jnp.dot(ent_mean.astype(ww_ref.dtype), ww_ref[...],
                        preferred_element_type=f32)
        ws = jax.nn.sigmoid(jnp.sum(gated * ctx_mean, axis=-1, keepdims=True))

        pos_score = jnp.sum(head * pos_mean, axis=-1, keepdims=True)
        w_valid = ws * valid_ref[...]                          # zero for padded rows

        total = jnp.zeros((1, 1), f32)
        for kk in range(k_neg):                                # K static, unrolled
            neg_mean = means[(4 + kk) * nb:(5 + kk) * nb]
            neg_score = jnp.sum(head * neg_mean, axis=-1, keepdims=True)
            hinge = jnp.maximum(margin + neg_score - pos_score, 0.0) * w_valid
            total = total + jnp.sum(hinge, axis=0, keepdims=True)

        # MarginRankingLoss mean over the true M negatives, scaled by lambda_w.
        loss_ref[...] = jnp.broadcast_to(total * (lambda_w / m_true), loss_ref.shape)
        # Lane-dense (N_blk, 128) ws slab (wrapper slices column 0).
        ws_ref[...] = jnp.broadcast_to(ws, ws_ref.shape)


def _vmem_budget_bytes():
    phys = 64 * 1024 * 1024
    try:
        phys = int(pltpu.get_tpu_info().vmem_capacity_bytes)
    except Exception:
        pass
    # Leave ~16 MiB compiler headroom: ~48 MiB on v7x (64 MiB physical per TC),
    # up to 100 MiB on 128 MiB parts (v5e/v6e).
    return max(16 * 1024 * 1024, min(phys - 16 * 1024 * 1024, 100 * 1024 * 1024))


def _num_tensorcores():
    try:
        kind = jax.devices()[0].device_kind.lower()
    except Exception:
        return 1
    return 2 if any(t in kind for t in ("v4", "v5p", "v7", "tpu7")) else 1


def coref_ctxt_mrl_forward(h_x, referent_idx, pos_spans, neg_spans,
                           entity_spans, ctx_spans, attrib_ids,
                           attrib_table, w_weight, loss_margin, lambda_w,
                           t_tile=1024, n_blocks=None,
                           compute_dtype=jnp.bfloat16):
    """Packs span indices, tiles the token axis, calls the fused Pallas kernel."""
    B, S, H = h_x.shape
    T = B * S
    N = int(referent_idx.shape[0])
    M = int(neg_spans.shape[0])
    K = M // N
    assert N * K == M, "negatives must be grouped K-per-positive"
    G = 4 + K                                  # referent, pos ctx, entity, ctx, K negatives

    i32 = jnp.int32
    f32 = jnp.float32
    csz = jnp.dtype(compute_dtype).itemsize

    # --- padding / block layout --------------------------------------------
    H_pad = -(-H // 128) * 128                 # lane-dense hidden dim
    N_pad = -(-N // 8) * 8

    if n_blocks is None:
        n_blocks = _num_tensorcores()
    n_blocks = max(1, min(int(n_blocks), N_pad // 8))
    while N_pad % (8 * n_blocks) != 0:
        n_blocks -= 1
    N_blk = N_pad // n_blocks
    R_blk = G * N_blk                          # stacked rows per positive block

    # --- token tile sized against the generation-aware VMEM budget ---------
    budget = _vmem_budget_bytes()

    def est_vmem(tt):
        lane = 128
        resident = 2 * (2 * R_blk * lane * 4   # spans (i32) + inv_len (f32), lane padded
                        + N_blk * lane * 4     # valid flags
                        + N_blk * H_pad * 4    # attrib head offsets (f32)
                        + H_pad * H_pad * csz  # Ww (compute dtype)
                        + N_blk * lane * 4     # ws output slab
                        + 8 * lane * 4)        # loss partial slab
        scratch = R_blk * H_pad * 4            # stacked f32 accumulator
        hx = 2 * tt * H_pad * csz              # double-buffered token tiles
        mask = R_blk * tt * csz                # fused mask intermediate
        return resident + scratch + hx + mask + (2 << 20)

    t_cap = -(-T // 8) * 8
    t_tile = max(8, (min(int(t_tile), t_cap) // 8) * 8)
    while t_tile > 64 and est_vmem(t_tile) > budget:
        t_tile = max(64, ((t_tile // 2) // 8) * 8)

    n_steps = -(-T // t_tile)
    T_pad = n_steps * t_tile

    # --- pack the stacked span table (referent treated as span [r, r+1)) ---
    ref_span = jnp.stack([referent_idx.astype(i32),
                          referent_idx.astype(i32) + 1], axis=-1)        # (N, 2)
    neg = jnp.moveaxis(neg_spans.astype(i32).reshape(N, K, 2), 1, 0)     # (K, N, 2)
    groups = jnp.concatenate([ref_span[None], pos_spans.astype(i32)[None],
                              entity_spans.astype(i32)[None],
                              ctx_spans.astype(i32)[None], neg], axis=0)  # (G, N, 2)
    groups = jnp.pad(groups, ((0, 0), (0, N_pad - N), (0, 0)))            # pad rows: empty spans
    spans = (groups.reshape(G, n_blocks, N_blk, 2)
                   .transpose(1, 0, 2, 3)
                   .reshape(n_blocks * R_blk, 2))                         # block-major layout

    # Exact f32 inverse span lengths (finalize stays exact, no approx reciprocal).
    # TODO(synk): empty spans (e <= s) are clamped to length 1 (zero mean) instead of
    # reproducing the 0/0 NaN a PyTorch mean-pool would emit for a genuinely empty span.
    lens = (spans[:, 1] - spans[:, 0]).astype(f32)
    inv_len = (1.0 / jnp.maximum(lens, 1.0)).reshape(n_blocks * R_blk, 1)

    valid = (jnp.arange(N_pad) < N).astype(f32).reshape(N_pad, 1)

    # Attribute lookup is a plain gather (no one-hot matmul); head offsets kept f32.
    attrib = jnp.zeros((N_pad, H_pad), f32).at[:N, :H].set(
        attrib_table[attrib_ids].astype(f32))

    hx_pad = jnp.zeros((T_pad, H_pad), compute_dtype).at[:T, :H].set(
        h_x.reshape(T, H).astype(compute_dtype))
    ww = jnp.zeros((H_pad, H_pad), compute_dtype).at[:H, :H].set(
        w_weight.astype(compute_dtype))

    kernel = functools.partial(_coref_mrl_kernel, float(loss_margin),
                               float(lambda_w), float(M), K, N_blk)

    def build(single_buffer):
        res = dict(pipeline_mode=pl.Buffered(1)) if single_buffer else {}
        grid_spec = pltpu.PrefetchScalarGridSpec(
            num_scalar_prefetch=0,
            grid=(n_blocks, n_steps),                       # (parallel N-blocks, T reduction)
            in_specs=[
                pl.BlockSpec((R_blk, 2), lambda b, k: (b, 0), **res),     # stacked spans
                pl.BlockSpec((R_blk, 1), lambda b, k: (b, 0), **res),     # exact inv lengths
                pl.BlockSpec((N_blk, 1), lambda b, k: (b, 0), **res),     # validity flags
                pl.BlockSpec((t_tile, H_pad), lambda b, k: (k, 0)),       # streamed hx tiles
                pl.BlockSpec((N_blk, H_pad), lambda b, k: (b, 0), **res), # gathered attribs
                pl.BlockSpec((H_pad, H_pad), lambda b, k: (0, 0), **res), # Ww (bf16)
            ],
            out_specs=(
                pl.BlockSpec((8, 128), lambda b, k: (b, 0)),              # per-block loss partial
                pl.BlockSpec((N_blk, 128), lambda b, k: (b, 0), **res),   # ws slab
            ),
            scratch_shapes=[pltpu.VMEM((R_blk, H_pad), jnp.float32)],     # fused accumulator
        )
        return pl.pallas_call(
            kernel,
            grid_spec=grid_spec,
            out_shape=(jax.ShapeDtypeStruct((n_blocks * 8, 128), f32),
                       jax.ShapeDtypeStruct((n_blocks * N_blk, 128), f32)),
            compiler_params=pltpu.CompilerParams(
                dimension_semantics=("parallel", "arbitrary"),
                vmem_limit_bytes=int(budget)),
        )

    args = (spans, inv_len, valid, hx_pad, attrib, ww)
    try:
        loss_out, ws_out = build(single_buffer=True)(*args)
        jax.block_until_ready((loss_out, ws_out))
    except Exception:
        # pl.Buffered(1) not supported on this jax version -> default double buffering.
        loss_out, ws_out = build(single_buffer=False)(*args)

    loss = jnp.sum(loss_out[::8, 0])           # sum per-block loss partials
    ws = ws_out[:N, 0]
    # TODO(synk): data_monitor.update_data is a host-side logging side effect;
    # ws min/max can be computed from the returned `ws`, not emulated here.
    return loss, h_x, ws


if __name__ == "__main__":
    key = jax.random.PRNGKey(0)
    B, S, H = 2, 16, 32          # small shapes consistent with the module
    V_ATTR = 6                   # attribute vocabulary for ar_model table
    K = 2                        # negatives per positive

    k1, k2, k3 = jax.random.split(key, 3)
    h_x = jax.random.normal(k1, (B, S, H), dtype=jnp.float32)
    attrib_table = 0.02 * jax.random.normal(k2, (V_ATTR, H), dtype=jnp.float32)  # ar_model param
    w_weight = 0.05 * jax.random.normal(k3, (H, H), dtype=jnp.float32)           # w_model bilinear param

    T = B * S
    # Deterministic stand-in for CorefCtxtNegativeSampler output, already
    # batch-flattened via offsets (offsets = [0, S]).
    referent_idx = jnp.array([1, 5, 9, 13, 17, 21, 25, 29], dtype=jnp.int32)     # N = 8
    pos_spans = jnp.array([[2, 5], [6, 9], [10, 13], [14, 16],
                           [18, 21], [22, 25], [26, 29], [30, 32]], dtype=jnp.int32)
    neg_list = []
    for n in range(8):                    # K=2 corrupted-context negatives, grouped per positive
        base = (n * 3 + 4) % (T - 4)
        alt = (base + 7) % (T - 4)
        neg_list.append([base, base + 3])
        neg_list.append([alt, alt + 3])
    neg_spans = jnp.array(neg_list, dtype=jnp.int32)                              # (16, 2)
    entity_spans = jnp.stack([referent_idx, referent_idx + 2], axis=1).astype(jnp.int32)
    ctx_spans = pos_spans
    attrib_ids = jnp.array([0, 1, 2, 3, 4, 5, 0, 1], dtype=jnp.int32)

    # t_tile=16 -> 2-step token reduction, exercising init / accumulate / finalize.
    loss, h_out, ws = coref_ctxt_mrl_forward(
        h_x, referent_idx, pos_spans, neg_spans, entity_spans, ctx_spans,
        attrib_ids, attrib_table, w_weight, loss_margin=1.0, lambda_w=0.5,
        t_tile=16)

    jax.block_until_ready((loss, h_out, ws))
    assert bool(jnp.isfinite(loss)), "loss is not finite"
    assert bool(jnp.all(jnp.isfinite(ws))), "ws is not finite"
    assert ws.shape == (8,)
    print("KERNEL_OK")
</pallas_src>

<mosaic_0001>
module attributes {stable_mosaic.version = 11 : i64} {
  func.func @_coref_mrl_kernel(%arg0: i32, %arg1: i32, %arg2: memref<48x2xi32, #tpu.memory_space<vmem>>, %arg3: memref<48x1xf32, #tpu.memory_space<vmem>>, %arg4: memref<8x1xf32, #tpu.memory_space<vmem>>, %arg5: memref<16x128xbf16, #tpu.memory_space<vmem>>, %arg6: memref<8x128xf32, #tpu.memory_space<vmem>>, %arg7: memref<128x128xbf16, #tpu.memory_space<vmem>>, %arg8: memref<8x128xf32, #tpu.memory_space<vmem>>, %arg9: memref<8x128xf32, #tpu.memory_space<vmem>>, %arg10: memref<48x128xf32, #tpu.memory_space<vmem>>) attributes {dimension_semantics = [#tpu.dimension_semantics<parallel>, #tpu.dimension_semantics<arbitrary>], iteration_bounds = array<i64: 1, 2>, scalar_prefetch = 0 : i64, scratch_operands = 1 : i64, tpu.core_type = #tpu.core_type<tc>, window_params = [{pipeline_mode = #tpu.pipeline_mode<synchronous>, transform_indices = @transform_0, window_bounds = array<i64: 48, 2>}, {pipeline_mode = #tpu.pipeline_mode<synchronous>, transform_indices = @transform_1, window_bounds = array<i64: 48, 1>}, {pipeline_mode = #tpu.pipeline_mode<synchronous>, transform_indices = @transform_2, window_bounds = array<i64: 8, 1>}, {transform_indices = @transform_3, window_bounds = array<i64: 16, 128>}, {pipeline_mode = #tpu.pipeline_mode<synchronous>, transform_indices = @transform_4, window_bounds = array<i64: 8, 128>}, {pipeline_mode = #tpu.pipeline_mode<synchronous>, transform_indices = @transform_5, window_bounds = array<i64: 128, 128>}, {transform_indices = @transform_6, window_bounds = array<i64: 8, 128>}, {pipeline_mode = #tpu.pipeline_mode<synchronous>, transform_indices = @transform_7, window_bounds = array<i64: 8, 128>}]} {
    %c0_i32 = arith.constant 0 : i32
    %0 = arith.cmpi eq, %arg1, %c0_i32 : i32
    %1 = arith.extui %0 : i1 to i32
    %c0_i32_0 = arith.constant 0 : i32
    %2 = arith.cmpi ne, %1, %c0_i32_0 : i32
    scf.if %2 {
      %cst_10 = arith.constant 0.000000e+00 : f32
      %27 = vector.broadcast %cst_10 : f32 to vector<48x128xf32>
      %c0_11 = arith.constant 0 : index
      %c0_12 = arith.constant 0 : index
      %28 = vector.load %arg10[%c0_11, %c0_12] : memref<48x128xf32, #tpu.memory_space<vmem>>, vector<48x128xf32>
      tpu.vector_store %arg10[%c0_11, %c0_12], %27 {strides = array<i32>} : memref<48x128xf32, #tpu.memory_space<vmem>>, vector<48x128xf32>,
    } else {
    }
    %c16_i32 = arith.constant 16 : i32
    %3 = arith.muli %arg1, %c16_i32 : i32
    %4 = tpu.iota {dimensions = array<i32: 1>} : vector<1x16xi32>
    %5 = vector.broadcast %3 : i32 to vector<1x16xi32>
    %6 = arith.addi %5, %4 : vector<1x16xi32>
    %c0 = arith.constant 0 : index
    %c0_1 = arith.constant 0 : index
    %7 = vector.load %arg2[%c0, %c0_1] : memref<48x2xi32, #tpu.memory_space<vmem>>, vector<48x1xi32>
    %c0_2 = arith.constant 0 : index
    %c1 = arith.constant 1 : index
    %8 = vector.load %arg2[%c0_2, %c1] : memref<48x2xi32, #tpu.memory_space<vmem>>, vector<48x1xi32>
    %9 = vector.broadcast %6 : vector<1x16xi32> to vector<48x16xi32>
    %10 = vector.broadcast %7 : vector<48x1xi32> to vector<48x16xi32>
    %11 = arith.cmpi sge, %9, %10 : vector<48x16xi32>
    %12 = vector.broadcast %6 : vector<1x16xi32> to vector<48x16xi32>
    %13 = vector.broadcast %8 : vector<48x1xi32> to vector<48x16xi32>
    %14 = arith.cmpi slt, %12, %13 : vector<48x16xi32>
    %15 = arith.andi %11, %14 : vector<48x16xi1>
    %16 = arith.extui %15 : vector<48x16xi1> to vector<48x16xi32>
    %17 = arith.sitofp %16 : vector<48x16xi32> to vector<48x16xf32>
    %18 = arith.truncf %17 : vector<48x16xf32> to vector<48x16xbf16>
    %c0_3 = arith.constant 0 : index
    %c0_4 = arith.constant 0 : index
    %19 = vector.load %arg10[%c0_3, %c0_4] : memref<48x128xf32, #tpu.memory_space<vmem>>, vector<48x128xf32>
    %c0_5 = arith.constant 0 : index
    %c0_6 = arith.constant 0 : index
    %20 = vector.load %arg5[%c0_5, %c0_6] : memref<16x128xbf16, #tpu.memory_space<vmem>>, vector<16x128xbf16>
    %cst = arith.constant dense<0.000000e+00> : vector<48x128xf32>
    %21 = tpu.matmul %18, %20, %cst {dimension_numbers = #tpu.dot_dimension_numbers<[1], [0], [0], [1], [0, 0, 1, 1], [], []>} : vector<48x16xbf16>, vector<16x128xbf16>, vector<48x128xf32> -> vector<48x128xf32>
    %22 = arith.addf %19, %21 : vector<48x128xf32>
    %c0_7 = arith.constant 0 : index
    %c0_8 = arith.constant 0 : index
    %23 = vector.load %arg10[%c0_7, %c0_8] : memref<48x128xf32, #tpu.memory_space<vmem>>, vector<48x128xf32>
    tpu.vector_store %arg10[%c0_7, %c0_8], %22 {strides = array<i32>} : memref<48x128xf32, #tpu.memory_space<vmem>>, vector<48x128xf32>,
    %c1_i32 = arith.constant 1 : i32
    %24 = arith.cmpi eq, %arg1, %c1_i32 : i32
    %25 = arith.extui %24 : i1 to i32
    %c0_i32_9 = arith.constant 0 : i32
    %26 = arith.cmpi ne, %25, %c0_i32_9 : i32
    scf.if %26 {
      %c0_10 = arith.constant 0 : index
      %c0_11 = arith.constant 0 : index
      %27 = vector.load %arg10[%c0_10, %c0_11] : memref<48x128xf32, #tpu.memory_space<vmem>>, vector<48x128xf32>
      %c0_12 = arith.constant 0 : index
      %c0_13 = arith.constant 0 : index
      %28 = vector.load %arg3[%c0_12, %c0_13] : memref<48x1xf32, #tpu.memory_space<vmem>>, vector<48x1xf32>
      %29 = vector.broadcast %28 : vector<48x1xf32> to vector<48x128xf32>
      %30 = arith.mulf %27, %29 : vector<48x128xf32>
      %31 = vector.extract_strided_slice %30 {offsets = [0, 0], sizes = [8, 128], strides = [1, 1]} : vector<48x128xf32> to vector<8x128xf32>
      %c0_14 = arith.constant 0 : index
      %c0_15 = arith.constant 0 : index
      %32 = vector.load %arg6[%c0_14, %c0_15] : memref<8x128xf32, #tpu.memory_space<vmem>>, vector<8x128xf32>
      %33 = arith.addf %31, %32 : vector<8x128xf32>
      %34 = vector.extract_strided_slice %30 {offsets = [8, 0], sizes = [8, 128], strides = [1, 1]} : vector<48x128xf32> to vector<8x128xf32>
      %35 = vector.extract_strided_slice %30 {offsets = [16, 0], sizes = [8, 128], strides = [1, 1]} : vector<48x128xf32> to vector<8x128xf32>
      %36 = vector.extract_strided_slice %30 {offsets = [24, 0], sizes = [8, 128], strides = [1, 1]} : vector<48x128xf32> to vector<8x128xf32>
      %37 = arith.truncf %35 : vector<8x128xf32> to vector<8x128xbf16>
      %c0_16 = arith.constant 0 : index
      %c0_17 = arith.constant 0 : index
      %38 = vector.load %arg7[%c0_16, %c0_17] : memref<128x128xbf16, #tpu.memory_space<vmem>>, vector<128x128xbf16>
      %cst_18 = arith.constant dense<0.000000e+00> : vector<8x128xf32>
      %39 = tpu.matmul %37, %38, %cst_18 {dimension_numbers = #tpu.dot_dimension_numbers<[1], [0], [0], [1], [0, 0, 1, 1], [], []>} : vector<8x128xbf16>, vector<128x128xbf16>, vector<8x128xf32> -> vector<8x128xf32>
      %40 = arith.mulf %39, %36 : vector<8x128xf32>
      %cst_19 = arith.constant dense<0.000000e+00> : vector<8xf32>
      %41 = vector.multi_reduction <add>, %40, %cst_19 [1] : vector<8x128xf32> to vector<8xf32>
      %42 = vector.shape_cast %41 : vector<8xf32> to vector<8x1xf32>
      %43 = arith.negf %42 : vector<8x1xf32>
      %44 = math.exp %43 : vector<8x1xf32>
      %cst_20 = arith.constant 1.000000e+00 : f32
      %45 = vector.broadcast %cst_20 : f32 to vector<8x1xf32>
      %46 = arith.addf %45, %44 : vector<8x1xf32>
      %47 = arith.divf %45, %46 : vector<8x1xf32>
      %48 = arith.mulf %33, %34 : vector<8x128xf32>
      %cst_21 = arith.constant dense<0.000000e+00> : vector<8xf32>
      %49 = vector.multi_reduction <add>, %48, %cst_21 [1] : vector<8x128xf32> to vector<8xf32>
      %50 = vector.shape_cast %49 : vector<8xf32> to vector<8x1xf32>
      %c0_22 = arith.constant 0 : index
      %c0_23 = arith.constant 0 : index
      %51 = vector.load %arg4[%c0_22, %c0_23] : memref<8x1xf32, #tpu.memory_space<vmem>>, vector<8x1xf32>
      %52 = arith.mulf %47, %51 : vector<8x1xf32>
      %cst_24 = arith.constant 0.000000e+00 : f32
      %53 = vector.broadcast %cst_24 : f32 to vector<1x1xf32>
      %54 = vector.extract_strided_slice %30 {offsets = [32, 0], sizes = [8, 128], strides = [1, 1]} : vector<48x128xf32> to vector<8x128xf32>
      %55 = arith.mulf %33, %54 : vector<8x128xf32>
      %cst_25 = arith.constant dense<0.000000e+00> : vector<8xf32>
      %56 = vector.multi_reduction <add>, %55, %cst_25 [1] : vector<8x128xf32> to vector<8xf32>
      %57 = vector.shape_cast %56 : vector<8xf32> to vector<8x1xf32>
      %cst_26 = arith.constant 1.000000e+00 : f32
      %58 = vector.broadcast %cst_26 : f32 to vector<8x1xf32>
      %59 = arith.addf %58, %57 : vector<8x1xf32>
      %60 = arith.subf %59, %50 : vector<8x1xf32>
      %cst_27 = arith.constant 0.000000e+00 : f32
      %61 = vector.broadcast %cst_27 : f32 to vector<8x1xf32>
      %62 = arith.maximumf %60, %61 : vector<8x1xf32>
      %63 = arith.mulf %62, %52 : vector<8x1xf32>
      %cst_28 = arith.constant dense<0.000000e+00> : vector<1xf32>
      %64 = vector.multi_reduction <add>, %63, %cst_28 [0] : vector<8x1xf32> to vector<1xf32>
      %65 = vector.shape_cast %64 : vector<1xf32> to vector<1x1xf32>
      %66 = arith.addf %53, %65 : vector<1x1xf32>
      %67 = vector.extract_strided_slice %30 {offsets = [40, 0], sizes = [8, 128], strides = [1, 1]} : vector<48x128xf32> to vector<8x128xf32>
      %68 = arith.mulf %33, %67 : vector<8x128xf32>
      %cst_29 = arith.constant dense<0.000000e+00> : vector<8xf32>
      %69 = vector.multi_reduction <add>, %68, %cst_29 [1] : vector<8x128xf32> to vector<8xf32>
      %70 = vector.shape_cast %69 : vector<8xf32> to vector<8x1xf32>
      %cst_30 = arith.constant 1.000000e+00 : f32
      %71 = vector.broadcast %cst_30 : f32 to vector<8x1xf32>
      %72 = arith.addf %71, %70 : vector<8x1xf32>
      %73 = arith.subf %72, %50 : vector<8x1xf32>
      %cst_31 = arith.constant 0.000000e+00 : f32
      %74 = vector.broadcast %cst_31 : f32 to vector<8x1xf32>
      %75 = arith.maximumf %73, %74 : vector<8x1xf32>
      %76 = arith.mulf %75, %52 : vector<8x1xf32>
      %cst_32 = arith.constant dense<0.000000e+00> : vector<1xf32>
      %77 = vector.multi_reduction <add>, %76, %cst_32 [0] : vector<8x1xf32> to vector<1xf32>
      %78 = vector.shape_cast %77 : vector<1xf32> to vector<1x1xf32>
      %79 = arith.addf %66, %78 : vector<1x1xf32>
      %cst_33 = arith.constant 3.125000e-02 : f32
      %80 = vector.broadcast %cst_33 : f32 to vector<1x1xf32>
      %81 = arith.mulf %79, %80 : vector<1x1xf32>
      %82 = vector.shape_cast %81 : vector<1x1xf32> to vector<1x1xf32>
      %83 = vector.broadcast %82 : vector<1x1xf32> to vector<8x128xf32>
      %c0_34 = arith.constant 0 : index
      %c0_35 = arith.constant 0 : index
      %84 = vector.load %arg8[%c0_34, %c0_35] : memref<8x128xf32, #tpu.memory_space<vmem>>, vector<8x128xf32>
      tpu.vector_store %arg8[%c0_34, %c0_35], %83 {strides = array<i32>} : memref<8x128xf32, #tpu.memory_space<vmem>>, vector<8x128xf32>,
      %85 = vector.shape_cast %47 : vector<8x1xf32> to vector<8x1xf32>
      %86 = vector.broadcast %85 : vector<8x1xf32> to vector<8x128xf32>
      %c0_36 = arith.constant 0 : index
      %c0_37 = arith.constant 0 : index
      %87 = vector.load %arg9[%c0_36, %c0_37] : memref<8x128xf32, #tpu.memory_space<vmem>>, vector<8x128xf32>
      tpu.vector_store %arg9[%c0_36, %c0_37], %86 {strides = array<i32>} : memref<8x128xf32, #tpu.memory_space<vmem>>, vector<8x128xf32>,
    } else {
    }
    return
  }
  func.func @transform_0(%arg0: i32, %arg1: i32) -> (i32, i32) {
    %c0_i32 = arith.constant 0 : i32
    %c0_i32_0 = arith.constant 0 : i32
    return %arg0, %c0_i32 : i32, i32
  }
  func.func @transform_1(%arg0: i32, %arg1: i32) -> (i32, i32) {
    %c0_i32 = arith.constant 0 : i32
    %c0_i32_0 = arith.constant 0 : i32
    return %arg0, %c0_i32 : i32, i32
  }
  func.func @transform_2(%arg0: i32, %arg1: i32) -> (i32, i32) {
    %c0_i32 = arith.constant 0 : i32
    %c0_i32_0 = arith.constant 0 : i32
    return %arg0, %c0_i32 : i32, i32
  }
  func.func @transform_3(%arg0: i32, %arg1: i32) -> (i32, i32) {
    %c0_i32 = arith.constant 0 : i32
    %c0_i32_0 = arith.constant 0 : i32
    return %arg1, %c0_i32 : i32, i32
  }
  func.func @transform_4(%arg0: i32, %arg1: i32) -> (i32, i32) {
    %c0_i32 = arith.constant 0 : i32
    %c0_i32_0 = arith.constant 0 : i32
    return %arg0, %c0_i32 : i32, i32
  }
  func.func @transform_5(%arg0: i32, %arg1: i32) -> (i32, i32) {
    %c0_i32 = arith.constant 0 : i32
    %c0_i32_0 = arith.constant 0 : i32
    %c0_i32_1 = arith.constant 0 : i32
    return %c0_i32, %c0_i32_0 : i32, i32
  }
  func.func @transform_6(%arg0: i32, %arg1: i32) -> (i32, i32) {
    %c0_i32 = arith.constant 0 : i32
    %c0_i32_0 = arith.constant 0 : i32
    return %arg0, %c0_i32 : i32, i32
  }
  func.func @transform_7(%arg0: i32, %arg1: i32) -> (i32, i32) {
    %c0_i32 = arith.constant 0 : i32
    %c0_i32_0 = arith.constant 0 : i32
    return %arg0, %c0_i32 : i32, i32
  }
}

module attributes {stable_mosaic.version = 11 : i64} {
  func.func @_coref_mrl_kernel(%arg0: i32, %arg1: i32, %arg2: memref<48x2xi32, #tpu.memory_space<vmem>>, %arg3: memref<48x1xf32, #tpu.memory_space<vmem>>, %arg4: memref<8x1xf32, #tpu.memory_space<vmem>>, %arg5: memref<16x128xbf16, #tpu.memory_space<vmem>>, %arg6: memref<8x128xf32, #tpu.memory_space<vmem>>, %arg7: memref<128x128xbf16, #tpu.memory_space<vmem>>, %arg8: memref<8x128xf32, #tpu.memory_space<vmem>>, %arg9: memref<8x128xf32, #tpu.memory_space<vmem>>, %arg10: memref<48x128xf32, #tpu.memory_space<vmem>>) attributes {dimension_semantics = [#tpu.dimension_semantics<parallel>, #tpu.dimension_semantics<arbitrary>], iteration_bounds = array<i64: 1, 2>, scalar_prefetch = 0 : i64, scratch_operands = 1 : i64, tpu.core_type = #tpu.core_type<tc>, window_params = [{transform_indices = @transform_0, window_bounds = array<i64: 48, 2>}, {transform_indices = @transform_1, window_bounds = array<i64: 48, 1>}, {transform_indices = @transform_2, window_bounds = array<i64: 8, 1>}, {transform_indices = @transform_3, window_bounds = array<i64: 16, 128>}, {transform_indices = @transform_4, window_bounds = array<i64: 8, 128>}, {pipeline_mode = #tpu.pipeline_mode<synchronous>, transform_indices = @transform_5, window_bounds = array<i64: 128, 128>}, {transform_indices = @transform_6, window_bounds = array<i64: 8, 128>}, {transform_indices = @transform_7, window_bounds = array<i64: 8, 128>}]} {
    %c0_i32 = arith.constant 0 : i32
    %0 = arith.cmpi eq, %arg1, %c0_i32 : i32
    %1 = arith.extui %0 : i1 to i32
    %c0_i32_0 = arith.constant 0 : i32
    %2 = arith.cmpi ne, %1, %c0_i32_0 : i32
    scf.if %2 {
      %cst_10 = arith.constant 0.000000e+00 : f32
      %27 = vector.broadcast %cst_10 : f32 to vector<48x128xf32>
      %c0_11 = arith.constant 0 : index
      %c0_12 = arith.constant 0 : index
      %28 = vector.load %arg10[%c0_11, %c0_12] : memref<48x128xf32, #tpu.memory_space<vmem>>, vector<48x128xf32>
      tpu.vector_store %arg10[%c0_11, %c0_12], %27 {strides = array<i32>} : memref<48x128xf32, #tpu.memory_space<vmem>>, vector<48x128xf32>,
    } else {
    }
    %c16_i32 = arith.constant 16 : i32
    %3 = arith.muli %arg1, %c16_i32 : i32
    %4 = tpu.iota {dimensions = array<i32: 1>} : vector<1x16xi32>
    %5 = vector.broadcast %3 : i32 to vector<1x16xi32>
    %6 = arith.addi %5, %4 : vector<1x16xi32>
    %c0 = arith.constant 0 : index
    %c0_1 = arith.constant 0 : index
    %7 = vector.load %arg2[%c0, %c0_1] : memref<48x2xi32, #tpu.memory_space<vmem>>, vector<48x1xi32>
    %c0_2 = arith.constant 0 : index
    %c1 = arith.constant 1 : index
    %8 = vector.load %arg2[%c0_2, %c1] : memref<48x2xi32, #tpu.memory_space<vmem>>, vector<48x1xi32>
    %9 = vector.broadcast %6 : vector<1x16xi32> to vector<48x16xi32>
    %10 = vector.broadcast %7 : vector<48x1xi32> to vector<48x16xi32>
    %11 = arith.cmpi sge, %9, %10 : vector<48x16xi32>
    %12 = vector.broadcast %6 : vector<1x16xi32> to vector<48x16xi32>
    %13 = vector.broadcast %8 : vector<48x1xi32> to vector<48x16xi32>
    %14 = arith.cmpi slt, %12, %13 : vector<48x16xi32>
    %15 = arith.andi %11, %14 : vector<48x16xi1>
    %16 = arith.extui %15 : vector<48x16xi1> to vector<48x16xi32>
    %17 = arith.sitofp %16 : vector<48x16xi32> to vector<48x16xf32>
    %18 = arith.truncf %17 : vector<48x16xf32> to vector<48x16xbf16>
    %c0_3 = arith.constant 0 : index
    %c0_4 = arith.constant 0 : index
    %19 = vector.load %arg10[%c0_3, %c0_4] : memref<48x128xf32, #tpu.memory_space<vmem>>, vector<48x128xf32>
    %c0_5 = arith.constant 0 : index
    %c0_6 = arith.constant 0 : index
    %20 = vector.load %arg5[%c0_5, %c0_6] : memref<16x128xbf16, #tpu.memory_space<vmem>>, vector<16x128xbf16>
    %cst = arith.constant dense<0.000000e+00> : vector<48x128xf32>
    %21 = tpu.matmul %18, %20, %cst {dimension_numbers = #tpu.dot_dimension_numbers<[1], [0], [0], [1], [0, 0, 1, 1], [], []>} : vector<48x16xbf16>, vector<16x128xbf16>, vector<48x128xf32> -> vector<48x128xf32>
    %22 = arith.addf %19, %21 : vector<48x128xf32>
    %c0_7 = arith.constant 0 : index
    %c0_8 = arith.constant 0 : index
    %23 = vector.load %arg10[%c0_7, %c0_8] : memref<48x128xf32, #tpu.memory_space<vmem>>, vector<48x128xf32>
    tpu.vector_store %arg10[%c0_7, %c0_8], %22 {strides = array<i32>} : memref<48x128xf32, #tpu.memory_space<vmem>>, vector<48x128xf32>,
    %c1_i32 = arith.constant 1 : i32
    %24 = arith.cmpi eq, %arg1, %c1_i32 : i32
    %25 = arith.extui %24 : i1 to i32
    %c0_i32_9 = arith.constant 0 : i32
    %26 = arith.cmpi ne, %25, %c0_i32_9 : i32
    scf.if %26 {
      %c0_10 = arith.constant 0 : index
      %c0_11 = arith.constant 0 : index
      %27 = vector.load %arg10[%c0_10, %c0_11] : memref<48x128xf32, #tpu.memory_space<vmem>>, vector<48x128xf32>
      %c0_12 = arith.constant 0 : index
      %c0_13 = arith.constant 0 : index
      %28 = vector.load %arg3[%c0_12, %c0_13] : memref<48x1xf32, #tpu.memory_space<vmem>>, vector<48x1xf32>
      %29 = vector.broadcast %28 : vector<48x1xf32> to vector<48x128xf32>
      %30 = arith.mulf %27, %29 : vector<48x128xf32>
      %31 = vector.extract_strided_slice %30 {offsets = [0, 0], sizes = [8, 128], strides = [1, 1]} : vector<48x128xf32> to vector<8x128xf32>
      %c0_14 = arith.constant 0 : index
      %c0_15 = arith.constant 0 : index
      %32 = vector.load %arg6[%c0_14, %c0_15] : memref<8x128xf32, #tpu.memory_space<vmem>>, vector<8x128xf32>
      %33 = arith.addf %31, %32 : vector<8x128xf32>
      %34 = vector.extract_strided_slice %30 {offsets = [8, 0], sizes = [8, 128], strides = [1, 1]} : vector<48x128xf32> to vector<8x128xf32>
      %35 = vector.extract_strided_slice %30 {offsets = [16, 0], sizes = [8, 128], strides = [1, 1]} : vector<48x128xf32> to vector<8x128xf32>
      %36 = vector.extract_strided_slice %30 {offsets = [24, 0], sizes = [8, 128], strides = [1, 1]} : vector<48x128xf32> to vector<8x128xf32>
      %37 = arith.truncf %35 : vector<8x128xf32> to vector<8x128xbf16>
      %c0_16 = arith.constant 0 : index
      %c0_17 = arith.constant 0 : index
      %38 = vector.load %arg7[%c0_16, %c0_17] : memref<128x128xbf16, #tpu.memory_space<vmem>>, vector<128x128xbf16>
      %cst_18 = arith.constant dense<0.000000e+00> : vector<8x128xf32>
      %39 = tpu.matmul %37, %38, %cst_18 {dimension_numbers = #tpu.dot_dimension_numbers<[1], [0], [0], [1], [0, 0, 1, 1], [], []>} : vector<8x128xbf16>, vector<128x128xbf16>, vector<8x128xf32> -> vector<8x128xf32>
      %40 = arith.mulf %39, %36 : vector<8x128xf32>
      %cst_19 = arith.constant dense<0.000000e+00> : vector<8xf32>
      %41 = vector.multi_reduction <add>, %40, %cst_19 [1] : vector<8x128xf32> to vector<8xf32>
      %42 = vector.shape_cast %41 : vector<8xf32> to vector<8x1xf32>
      %43 = arith.negf %42 : vector<8x1xf32>
      %44 = math.exp %43 : vector<8x1xf32>
      %cst_20 = arith.constant 1.000000e+00 : f32
      %45 = vector.broadcast %cst_20 : f32 to vector<8x1xf32>
      %46 = arith.addf %45, %44 : vector<8x1xf32>
      %47 = arith.divf %45, %46 : vector<8x1xf32>
      %48 = arith.mulf %33, %34 : vector<8x128xf32>
      %cst_21 = arith.constant dense<0.000000e+00> : vector<8xf32>
      %49 = vector.multi_reduction <add>, %48, %cst_21 [1] : vector<8x128xf32> to vector<8xf32>
      %50 = vector.shape_cast %49 : vector<8xf32> to vector<8x1xf32>
      %c0_22 = arith.constant 0 : index
      %c0_23 = arith.constant 0 : index
      %51 = vector.load %arg4[%c0_22, %c0_23] : memref<8x1xf32, #tpu.memory_space<vmem>>, vector<8x1xf32>
      %52 = arith.mulf %47, %51 : vector<8x1xf32>
      %cst_24 = arith.constant 0.000000e+00 : f32
      %53 = vector.broadcast %cst_24 : f32 to vector<1x1xf32>
      %54 = vector.extract_strided_slice %30 {offsets = [32, 0], sizes = [8, 128], strides = [1, 1]} : vector<48x128xf32> to vector<8x128xf32>
      %55 = arith.mulf %33, %54 : vector<8x128xf32>
      %cst_25 = arith.constant dense<0.000000e+00> : vector<8xf32>
      %56 = vector.multi_reduction <add>, %55, %cst_25 [1] : vector<8x128xf32> to vector<8xf32>
      %57 = vector.shape_cast %56 : vector<8xf32> to vector<8x1xf32>
      %cst_26 = arith.constant 1.000000e+00 : f32
      %58 = vector.broadcast %cst_26 : f32 to vector<8x1xf32>
      %59 = arith.addf %58, %57 : vector<8x1xf32>
      %60 = arith.subf %59, %50 : vector<8x1xf32>
      %cst_27 = arith.constant 0.000000e+00 : f32
      %61 = vector.broadcast %cst_27 : f32 to vector<8x1xf32>
      %62 = arith.maximumf %60, %61 : vector<8x1xf32>
      %63 = arith.mulf %62, %52 : vector<8x1xf32>
      %cst_28 = arith.constant dense<0.000000e+00> : vector<1xf32>
      %64 = vector.multi_reduction <add>, %63, %cst_28 [0] : vector<8x1xf32> to vector<1xf32>
      %65 = vector.shape_cast %64 : vector<1xf32> to vector<1x1xf32>
      %66 = arith.addf %53, %65 : vector<1x1xf32>
      %67 = vector.extract_strided_slice %30 {offsets = [40, 0], sizes = [8, 128], strides = [1, 1]} : vector<48x128xf32> to vector<8x128xf32>
      %68 = arith.mulf %33, %67 : vector<8x128xf32>
      %cst_29 = arith.constant dense<0.000000e+00> : vector<8xf32>
      %69 = vector.multi_reduction <add>, %68, %cst_29 [1] : vector<8x128xf32> to vector<8xf32>
      %70 = vector.shape_cast %69 : vector<8xf32> to vector<8x1xf32>
      %cst_30 = arith.constant 1.000000e+00 : f32
      %71 = vector.broadcast %cst_30 : f32 to vector<8x1xf32>
      %72 = arith.addf %71, %70 : vector<8x1xf32>
      %73 = arith.subf %72, %50 : vector<8x1xf32>
      %cst_31 = arith.constant 0.000000e+00 : f32
      %74 = vector.broadcast %cst_31 : f32 to vector<8x1xf32>
      %75 = arith.maximumf %73, %74 : vector<8x1xf32>
      %76 = arith.mulf %75, %52 : vector<8x1xf32>
      %cst_32 = arith.constant dense<0.000000e+00> : vector<1xf32>
      %77 = vector.multi_reduction <add>, %76, %cst_32 [0] : vector<8x1xf32> to vector<1xf32>
      %78 = vector.shape_cast %77 : vector<1xf32> to vector<1x1xf32>
      %79 = arith.addf %66, %78 : vector<1x1xf32>
      %cst_33 = arith.constant 3.125000e-02 : f32
      %80 = vector.broadcast %cst_33 : f32 to vector<1x1xf32>
      %81 = arith.mulf %79, %80 : vector<1x1xf32>
      %82 = vector.shape_cast %81 : vector<1x1xf32> to vector<1x1xf32>
      %83 = vector.broadcast %82 : vector<1x1xf32> to vector<8x128xf32>
      %c0_34 = arith.constant 0 : index
      %c0_35 = arith.constant 0 : index
      %84 = vector.load %arg8[%c0_34, %c0_35] : memref<8x128xf32, #tpu.memory_space<vmem>>, vector<8x128xf32>
      tpu.vector_store %arg8[%c0_34, %c0_35], %83 {strides = array<i32>} : memref<8x128xf32, #tpu.memory_space<vmem>>, vector<8x128xf32>,
      %85 = vector.shape_cast %47 : vector<8x1xf32> to vector<8x1xf32>
      %86 = vector.broadcast %85 : vector<8x1xf32> to vector<8x128xf32>
      %c0_36 = arith.constant 0 : index
      %c0_37 = arith.constant 0 : index
      %87 = vector.load %arg9[%c0_36, %c0_37] : memref<8x128xf32, #tpu.memory_space<vmem>>, vector<8x128xf32>
      tpu.vector_store %arg9[%c0_36, %c0_37], %86 {strides = array<i32>} : memref<8x128xf32, #tpu.memory_space<vmem>>, vector<8x128xf32>,
    } else {
    }
    return
  }
  func.func @transform_0(%arg0: i32, %arg1: i32) -> (i32, i32) {
    %c0_i32 = arith.constant 0 : i32
    %c0_i32_0 = arith.constant 0 : i32
    return %arg0, %c0_i32 : i32, i32
  }
  func.func @transform_1(%arg0: i32, %arg1: i32) -> (i32, i32) {
    %c0_i32 = arith.constant 0 : i32
    %c0_i32_0 = arith.constant 0 : i32
    return %arg0, %c0_i32 : i32, i32
  }
  func.func @transform_2(%arg0: i32, %arg1: i32) -> (i32, i32) {
    %c0_i32 = arith.constant 0 : i32
    %c0_i32_0 = arith.constant 0 : i32
    return %arg0, %c0_i32 : i32, i32
  }
  func.func @transform_3(%arg0: i32, %arg1: i32) -> (i32, i32) {
    %c0_i32 = arith.constant 0 : i32
    %c0_i32_0 = arith.constant 0 : i32
    return %arg1, %c0_i32 : i32, i32
  }
  func.func @transform_4(%arg0: i32, %arg1: i32) -> (i32, i32) {
    %c0_i32 = arith.constant 0 : i32
    %c0_i32_0 = arith.constant 0 : i32
    return %arg0, %c0_i32 : i32, i32
  }
  func.func @transform_5(%arg0: i32, %arg1: i32) -> (i32, i32) {
    %c0_i32 = arith.constant 0 : i32
    %c0_i32_0 = arith.constant 0 : i32
    %c0_i32_1 = arith.constant 0 : i32
    return %c0_i32, %c0_i32_0 : i32, i32
  }
  func.func @transform_6(%arg0: i32, %arg1: i32) -> (i32, i32) {
    %c0_i32 = arith.constant 0 : i32
    %c0_i32_0 = arith.constant 0 : i32
    return %arg0, %c0_i32 : i32, i32
  }
  func.func @transform_7(%arg0: i32, %arg1: i32) -> (i32, i32) {
    %c0_i32 = arith.constant 0 : i32
    %c0_i32_0 = arith.constant 0 : i32
    return %arg0, %c0_i32 : i32, i32
  }
}

</mosaic_0001>

<bundles_post_ra>
// kernel: tpu_custom_call.1
= control target key start
LH: loop header
LB: loop body
LE: loop exit
PB: predicated region body
PF: predicated region fallthrough
CT: control target
= control target key end

     0   :  { %13 = vsyncpa [#allocation4], 0  ;;  %s1265_s0 = inlined_call_operand.vmem [shape: s32[48,2], index: 0, kind: input, shape index: {}]   ;;  %s1266_s1 = inlined_call_operand.vmem [shape: f32[48,1], index: 1, kind: input, shape index: {}]   ;;  %s1267_s2 = inlined_call_operand.vmem [shape: f32[8,1], index: 2, kind: input, shape index: {}]   ;;  %s1268_s3 = inlined_call_operand.vmem [shape: bf16[32,128], index: 3, kind: input, shape index: {}]   ;;  %s1269_s4 = inlined_call_operand.vmem [shape: f32[8,128], index: 4, kind: input, shape index: {}]   ;;  %s1270_s5 = inlined_call_operand.vmem [shape: bf16[128,128], index: 5, kind: input, shape index: {}]   ;;  %s1271_s6 = inlined_call_operand.hbm [shape: f32[8,128], index: 6, kind: output, shape index: {0}]   ;;  %s1272_s7 = inlined_call_operand.hbm [shape: f32[8,128], index: 7, kind: output, shape index: {1}]  }
   0x1   :  { %14 = vsyncpa [#allocation6], 0  ;;  %s1132_s24 = smov 0   ;;  %s1134_s25 = smov 0  }
   0x2   :  { %s1136_s26 = smov 0  }
   0x3 LB: > { %s864_s27 = sadd.s32 4294967295, %s1083_s26   ;;  %s29_s28 = sadd.s32 1, %s1079_s25  ;;  %s1083_s26 = sphi %s1136_s26, %s20_s26   ;;  %s1079_s25 = sphi %s1134_s25, %s1275_s25   ;;  %s1075_s24 = sphi %s1132_s24, %s1274_s24  }
   0x4   : > { %p30_p0 = scmp.ge.s32.totalorder %s29_s28, 2  ;;  %p871_p1 = scmp.ge.s32.totalorder %s1083_s26, 1 }
   0x5   : > { %p295_p2 = scmp.lt.s32.totalorder %s1083_s26, 3 }
   0x6   : > { %s1277_s28 = smov (%p30_p0, %s29_s28), 0 }
   0x7   : > { %p296_p3 = pnand %p871_p1, %p295_p2 }
   0x8   : > { %s872_s29 = sshll.u32 (!%p296_p3), %s1075_s24, 1  ;;  %p874_p5 = scmp.ne.s32.totalorder (!%p296_p3), %s1075_s24, 0 }
   0x9   : > { %299 = sbr.rel (%p296_p3) target bundleno = 851 (0x353), region = 44  ;;  %p357_p4 = scmp.lt.s32.totalorder (!%p296_p3), %s872_s29, 3 }
   0xe   : > { %s1279_s29 = smov (!%p357_p4, %s872_s29), 3  ;;  %370 = sbr.rel (%p874_p5) target bundleno = 26 (0x1a), region = 48 }
   0xf   : > { %s873_s30 = sshll.u32 %s1279_s29, 2 }
  0x10   : > { %s1157_s10 = scalar_lea.vmem %s1268_s3, %s873_s30 }
  0x13   : > { %v1085_v0 = vmov 0.0  }
  0x14   : > { %371 = vst [vmem:[#allocation2 + $0x28] sm:$0xff] %v1085_v0 }
  0x15   : > { %372 = vst [vmem:[#allocation2 + $0x10] sm:$0xff] %v1085_v0 }
  0x16   : > { %373 = vst [vmem:[#allocation2 + $0x8] sm:$0xff] %v1085_v0 }
  0x17   : > { %374 = vst [vmem:[#allocation2] sm:$0xff] %v1085_v0 }
  0x18   : > { %375 = vst [vmem:[#allocation2 + $0x18] sm:$0xff] %v1085_v0 }
  0x19   : > { %376 = vst [vmem:[#allocation2 + $0x20] sm:$0xff] %v1085_v0 }
  0x1a PF: > { %v386_v1 = vld [vmem:[%s1265_s0 + $0x20] sm:$0xff]  ;;  %v1086_v2 = vmov 1   ;;  %v1087_v3 = vmov 0   ;;  %v387_v5 = vld [vmem:[%s1265_s0 + $0x28] sm:$0xff]  ;;  %v384_v7 = vld [vmem:[%s1265_s0 + $0x10] sm:$0xff]  ;;  %v378_v11 = vlaneseq  ;;  %s875_s23 = sshll.u32 %s1075_s24, 4 }
  0x1b   : > { %984 = vset.pattern.permute.xlu1 %v1086_v2  ;;  %983 = vset.pattern.permute.xlu0 %v1087_v3  ;;  %v382_v4 = vld [vmem:[%s1265_s0] sm:$0xff]  ;;  %v383_v6 = vld [vmem:[%s1265_s0 + $0x8] sm:$0xff]  ;;  %v385_v8 = vld [vmem:[%s1265_s0 + $0x18] sm:$0xff]  ;;  %v380_v13 = vstv %s875_s23  ;;  %v1088_v20 = vmov 0.0   ;;  %vm471_vm6 = vcmask 130048   ;;  %p889_p6 = scmp.ne.s32.totalorder %s1075_s24, 1 }
  0x1c   : > { %425 = vperm.xlu1 %984, %v386_v1   ;;  %401 = vperm.xlu0 %983, %v386_v1   ;;  %v929_v9 = vld [vmem:[%s1157_s10] sm:$0xff]  ;;  %v379_v12 = vand.u32 127, %v378_v11  ;;  %v457_v42 = vld [vmem:[#allocation2 + $0x28] sm:$0xff]  ;;  %v458_v48 = vld [vmem:[#allocation2 + $0x10] sm:$0xff] }
  0x1d   : > { %985 = vset.pattern.permute.xlu2 %v1087_v3  ;;  %939 = vmatpush.bf16.msra.mxu2 %v929_v9  ;;  %v459_v43 = vld [vmem:[#allocation2 + $0x8] sm:$0xff] }
  0x1e   : > { %389 = vperm.xlu2 %985, %v382_v4   ;;  %488 = vmatpush.bf16.msra.mxu0 %v929_v9  ;;  %v381_v16 = vadd.s32 %v380_v13, %v379_v12  ;;  %v460_v49 = vld [vmem:[#allocation2] sm:$0xff] }
  0x1f   : > { %938 = vmatpush.bf16.msra.mxu1 %v929_v9  ;;  %v461_v36 = vld [vmem:[#allocation2 + $0x18] sm:$0xff] }
  0x20   : > { %v462_v39 = vld [vmem:[#allocation2 + $0x20] sm:$0xff] }
  0x24   : > { %428 = vperm.xlu1 %984, %v387_v5   ;;  %404 = vperm.xlu0 %983, %v387_v5  }
  0x26   : > { %392 = vperm.xlu2 %985, %v383_v6  }
  0x2c   : > { %986 = vset.pattern.permute.xlu1 %v1087_v3  ;;  %395 = vperm.xlu0 %983, %v384_v7  }
  0x2d   : > { %398 = vperm.xlu1 %986, %v385_v8  }
  0x2e   : > { %987 = vset.pattern.permute.xlu2 %v1086_v2 }
  0x2f   : > { %413 = vperm.xlu2 %987, %v382_v4  }
  0x34   : > { %988 = vset.pattern.permute.xlu0 %v1086_v2 }
  0x35   : > { %989 = vset.pattern.permute.xlu1 %v1086_v2  ;;  %416 = vperm.xlu0 %988, %v383_v6  }
  0x36   : > { %419 = vperm.xlu1 %989, %v384_v7  }
  0x37   : > { %422 = vperm.xlu2 %987, %v385_v8  }
  0x78   : > { %v390_v10 = vpop.permute.xlu2 %389 }
  0x79   : > { %vm406_vm7 = vcmp.ge.s32.totalorder %v381_v16, %v390_v10 }
  0x80   : > { %v393_v17 = vpop.permute.xlu2 %392 }
  0x81   : > { %vm407_vm12 = vcmp.ge.s32.totalorder %v381_v16, %v393_v17 }
  0x89   : > { %v414_v23 = vpop.permute.xlu2 %413 }
  0x8a   : > { %vm430_vm8 = vcmp.lt.s32.totalorder %v381_v16, %v414_v23 }
  0x8b   : > { %vm436_vm11 = vmand %vm406_vm7, %vm430_vm8 }
  0x8c   : > { %v876_v30 = vsel %vm436_vm11, 1.0, %v1088_v20 }
  0x8e   : > { %v426_v14 = vpop.permute.xlu1 %425  ;;  %v402_v15 = vpop.permute.xlu0 %401 }
  0x8f   : > { %vm434_vm0 = vcmp.lt.s32.totalorder %v381_v16, %v426_v14  ;;  %vm410_vm1 = vcmp.ge.s32.totalorder %v381_v16, %v402_v15 }
  0x90   : > { %vm440_vm2 = vmand %vm410_vm1, %vm434_vm0 }
  0x91   : > { %v880_v21 = vsel %vm440_vm2, 1.0, %v1088_v20  ;;  %v423_v27 = vpop.permute.xlu2 %422 }
  0x92   : > { %vm433_vm10 = vcmp.lt.s32.totalorder %v381_v16, %v423_v27 }
  0x96   : > { %v429_v18 = vpop.permute.xlu1 %428  ;;  %v405_v19 = vpop.permute.xlu0 %404 }
  0x97   : > { %vm435_vm3 = vcmp.lt.s32.totalorder %v381_v16, %v429_v18  ;;  %vm411_vm4 = vcmp.ge.s32.totalorder %v381_v16, %v405_v19 }
  0x98   : > { %vm441_vm5 = vmand %vm411_vm4, %vm435_vm3 }
  0x99   : > { %v881_v22 = vsel %vm441_vm5, 1.0, %v1088_v20 }
  0x9a   : > { %v456_v24 = vpack.c.bf16 %v881_v22, %v880_v21 }
  0x9c   : > { %888 = vmatmul.msk.bf16.vlgmr.msra.gmra.mxu2 %vm471_vm6, %v456_v24 }
  0x9e   : > { %v396_v25 = vpop.permute.xlu0 %395 }
  0x9f   : > { %v399_v26 = vpop.permute.xlu1 %398  ;;  %vm408_vm15 = vcmp.ge.s32.totalorder %v381_v16, %v396_v25 }
  0xa0   : > { %vm409_vm9 = vcmp.ge.s32.totalorder %v381_v16, %v399_v26 }
  0xa1   : > { %vm439_vm13 = vmand %vm409_vm9, %vm433_vm10 }
  0xa2   : > { %v879_v32 = vsel %vm439_vm13, 1.0, %v1088_v20 }
  0xa7   : > { %v417_v28 = vpop.permute.xlu0 %416 }
  0xa8   : > { %vm431_vm14 = vcmp.lt.s32.totalorder %v381_v16, %v417_v28  ;;  %v420_v29 = vpop.permute.xlu1 %419 }
  0xa9   : > { %vm437_vm0 = vmand %vm407_vm12, %vm431_vm14  ;;  %vm432_vm1 = vcmp.lt.s32.totalorder %v381_v16, %v420_v29 }
  0xaa   : > { %v877_v31 = vsel %vm437_vm0, 1.0, %v1088_v20  ;;  %vm438_vm2 = vmand %vm408_vm15, %vm432_vm1 }
  0xab   : > { %v454_v33 = vpack.c.bf16 %v877_v31, %v876_v30  ;;  %v878_v34 = vsel %vm438_vm2, 1.0, %v1088_v20 }
  0xac   : > { %v455_v35 = vpack.c.bf16 %v879_v32, %v878_v34 }
  0xad   : > { %886 = vmatmul.msk.bf16.vlgmr.msra.gmra.mxu0 %vm471_vm6, %v454_v33 }
  0xae   : > { %887 = vmatmul.msk.bf16.vlgmr.msra.gmra.mxu1 %vm471_vm6, %v455_v35 }
 0x11f   : > { %v500_v37 = vpop.f32.mrf.mxu2 }
 0x120   : > { %v509_v38 = vadd.f32 %v500_v37, %v461_v36 }
 0x122   : > { %515 = vst [vmem:[#allocation2 + $0x18] sm:$0xff] %v509_v38 }
 0x127   : > { %v502_v40 = vpop.f32.mrf.mxu2 }
 0x128   : > { %v510_v41 = vadd.f32 %v502_v40, %v462_v39 }
 0x12a   : > { %516 = vst [vmem:[#allocation2 + $0x20] sm:$0xff] %v510_v41  ;;  %v490_v44 = vpop.f32.mrf.mxu0 }
 0x12b   : > { %v505_v45 = vadd.f32 %v490_v44, %v457_v42  ;;  %v495_v46 = vpop.f32.mrf.mxu1 }
 0x12c   : > { %v507_v47 = vadd.f32 %v495_v46, %v459_v43 }
 0x12d   : > { %511 = vst [vmem:[#allocation2 + $0x28] sm:$0xff] %v505_v45 }
 0x12e   : > { %513 = vst [vmem:[#allocation2 + $0x8] sm:$0xff] %v507_v47 }
 0x132   : > { %v492_v50 = vpop.f32.mrf.mxu0  ;;  %520 = sbr.rel (%p889_p6) target bundleno = 841 (0x349), region = 52 }
 0x133   : > { %v506_v51 = vadd.f32 %v492_v50, %v458_v48  ;;  %v497_v52 = vpop.f32.mrf.mxu1 }
 0x134   : > { %v508_v53 = vadd.f32 %v497_v52, %v460_v49 }
 0x135   : > { %512 = vst [vmem:[#allocation2 + $0x10] sm:$0xff] %v506_v51 }
 0x136   : > { %514 = vst [vmem:[#allocation2] sm:$0xff] %v508_v53 }
 0x137   : > { %v529_v54 = vld [vmem:[%s1266_s1 + $0x10] sm:$0xff]  ;;  %v937_v55 = vld [vmem:[%s1270_s5 + $0x38] sm:$0xff]  ;;  %v1089_v56 = vmov 0   ;;  %v935_v58 = vld [vmem:[%s1270_s5 + $0x28] sm:$0xff]  ;;  %vm683_vm7 = vcmask 7168  }
 0x138   : > { %990 = vset.pattern.permute.xlu0 %v1089_v56  ;;  %991 = vset.pattern.permute.xlu1 %v1089_v56  ;;  %v936_v57 = vld [vmem:[%s1270_s5 + $0x30] sm:$0xff]  ;;  %v530_v59 = vld [vmem:[%s1266_s1 + $0x18] sm:$0xff]  ;;  %v934_v60 = vld [vmem:[%s1270_s5 + $0x20] sm:$0xff] }
 0x139   : > { %545 = vperm.xlu0 %990, %v529_v54   ;;  %636 = vmatpush.bf16.msra.mxu0 %v937_v55  ;;  %v933_v61 = vld [vmem:[%s1270_s5 + $0x18] sm:$0xff]  ;;  %v932_v62 = vld [vmem:[%s1270_s5 + $0x10] sm:$0xff]  ;;  %v931_v63 = vld [vmem:[%s1270_s5 + $0x8] sm:$0xff] }
 0x13a   : > { %992 = vset.pattern.permute.xlu2 %v1089_v56  ;;  %v930_v0 = vld [vmem:[%s1270_s5] sm:$0xff]  ;;  %v532_v2 = vld [vmem:[%s1266_s1 + $0x28] sm:$0xff]  ;;  %v525_v18 = vld [vmem:[#allocation2 + $0x18] sm:$0xff] }
 0x13b   : > { %v527_v1 = vld [vmem:[%s1266_s1] sm:$0xff]  ;;  %560 = vperm.xlu2 %992, %v532_v2   ;;  %v528_v4 = vld [vmem:[%s1266_s1 + $0x8] sm:$0xff] }
 0x13c   : > { %535 = vperm.xlu1 %991, %v527_v1   ;;  %v531_v3 = vld [vmem:[%s1266_s1 + $0x20] sm:$0xff]  ;;  %v523_v5 = vld [vmem:[#allocation2 + $0x8] sm:$0xff]  ;;  %v522_v19 = vld [vmem:[#allocation2 + $0x10] sm:$0xff] }
 0x13d   : > { %637 = vmatpush.bf16.msra.mxu0 %v936_v57  ;;  %v569_v9 = vld [vmem:[%s1269_s4] sm:$0xff]  ;;  %v521_v11 = vld [vmem:[#allocation2 + $0x28] sm:$0xff] }
 0x13e   : > { %v526_v13 = vld [vmem:[#allocation2 + $0x20] sm:$0xff] }
 0x13f   : > { %v524_v27 = vld [vmem:[#allocation2] sm:$0xff] }
 0x140   : > { %v674_v51 = vld [vmem:[%s1267_s2] sm:$0xff] }
 0x141   : > { %550 = vperm.xlu0 %990, %v530_v59   ;;  %638 = vmatpush.bf16.msra.mxu0 %v935_v58 }
 0x143   : > { %540 = vperm.xlu2 %992, %v528_v4  }
 0x144   : > { %555 = vperm.xlu1 %991, %v531_v3  }
 0x145   : > { %639 = vmatpush.bf16.msra.mxu0 %v934_v60 }
 0x149   : > { %640 = vmatpush.bf16.msra.mxu0 %v933_v61 }
 0x14d   : > { %641 = vmatpush.bf16.msra.mxu0 %v932_v62 }
 0x151   : > { %642 = vmatpush.bf16.msra.mxu0 %v931_v63 }
 0x155   : > { %643 = vmatpush.bf16.msra.mxu0 %v930_v0 }
 0x195   : > { %v561_v12 = vpop.permute.xlu2 %560 }
 0x196   : > { %v568_v15 = vmul.f32 %v561_v12, %v526_v13 }
 0x19d   : > { %v541_v21 = vpop.permute.xlu2 %540 }
 0x19e   : > { %v564_v23 = vmul.f32 %v541_v21, %v522_v19 }
 0x1ab   : > { %v546_v6 = vpop.permute.xlu0 %545 }
 0x1ac   : > { %v565_v7 = vmul.f32 %v546_v6, %v523_v5 }
 0x1ae   : > { %v571_v8 = vpack.c.bf16 %v565_v7, %v565_v7  ;;  %v536_v10 = vpop.permute.xlu1 %535 }
 0x1af   : > { %v563_v14 = vmul.f32 %v536_v10, %v521_v11 }
 0x1b0   : > { %644 = vmatmul.bf16.vlgmr.msra.gmra.mxu0 %v571_v8 }
 0x1b1   : > { %v570_v16 = vadd.f32 %v569_v9, %v563_v14 }
 0x1b3   : > { %v692_v17 = vmul.f32 %v570_v16, %v568_v15  ;;  %v671_v25 = vmul.f32 %v570_v16, %v564_v23  ;;  %v551_v26 = vpop.permute.xlu0 %550 }
 0x1b4   : > { %v566_v28 = vmul.f32 %v551_v26, %v524_v27 }
 0x1b5   : > { %693 = vadd.xlane.f32.xlu2 %v692_v17 }
 0x1b6   : > { %v556_v20 = vpop.permute.xlu1 %555 }
 0x1b7   : > { %v567_v22 = vmul.f32 %v556_v20, %v525_v18 }
 0x1b9   : > { %v676_v24 = vmul.f32 %v570_v16, %v567_v22 }
 0x1bb   : > { %677 = vadd.xlane.f32.xlu1 %v676_v24 }
 0x1bd   : > { %672 = vadd.xlane.f32.xlu2 %v671_v25 }
 0x228   : > { %v694_v36 = vpop.xlane.xlu2 %693 }
 0x229   : > { %v695_v41 = vadd.f32 1.0, %v694_v36 }
 0x22d   : > { %v645_v29 = vpop.f32.mrf.mxu0 }
 0x22e   : > { %v649_v30 = vmul.f32 %v645_v29, %v566_v28  ;;  %v678_v38 = vpop.xlane.xlu1 %677 }
 0x22f   : > { %v679_v42 = vadd.f32 1.0, %v678_v38 }
 0x230   : > { %650 = vadd.xlane.f32.xlu0 %v649_v30  ;;  %v673_v44 = vpop.xlane.xlu2 %672 }
 0x231   : > { %v680_v48 = vsub.f32 %v679_v42, %v673_v44  ;;  %v696_v49 = vsub.f32 %v695_v41, %v673_v44 }
 0x233   : > { %v681_v55 = vmax.f32 %v680_v48, 0.0  ;;  %v697_v56 = vmax.f32 %v696_v49, 0.0 }
 0x235   : > { %v647_v31 = vpop.f32.mrf.mxu0 }
 0x2a3   : > { %v651_v32 = vpop.xlane.xlu0 %650 }
 0x2a4   : > { %v922_v33 = vmul.f32 -1.442695, %v651_v32 }
 0x2a6   : > { %993 = vpow2.f32 %v922_v33 }
 0x2ac   : > { %v994_v34 = vpop.eup %993 }
 0x2ad   : > { %v655_v35 = vadd.f32 1.0, %v994_v34 }
 0x2af   : > { %995 = vrcp.f32 %v655_v35  ;;  %v667_v43 = vand.u32 2147483648, %v655_v35  ;;  %v665_v46 = vand.u32 2147483647, %v655_v35  ;;  %vm661_vm4 = vweird.f32 %v655_v35 }
 0x2b1   : > { %v668_v50 = vor.u32 1.1754944e-38, %v667_v43  ;;  %vm666_vm6 = vcmp.eq.f32.partialorder %v665_v46, 8.507059e+37 }
 0x2b5   : > { %v996_v37 = vpop.eup %995 }
 0x2b6   : > { %v657_v39 = vmul.f32 %v996_v37, %v655_v35  ;;  %vm662_vm3 = vweird.f32 %v996_v37 }
 0x2b7   : > { %vm663_vm5 = vmor %vm661_vm4, %vm662_vm3 }
 0x2b8   : > { %v658_v40 = vsub.f32 1.0, %v657_v39 }
 0x2ba   : > { %v659_v45 = vmul.f32 %v996_v37, %v658_v40 }
 0x2bc   : > { %v660_v47 = vadd.f32 %v996_v37, %v659_v45 }
 0x2be   : > { %v664_v52 = vsel %vm663_vm5, %v996_v37, %v660_v47 }
 0x2bf   : > { %v669_v53 = vsel %vm666_vm6, %v668_v50, %v664_v52 }
 0x2c0   : > { %v675_v54 = vmul.f32 %v674_v51, %v669_v53  ;;  %714 = vst [vmem:[#allocation5] sm:$0xff] %v669_v53 }
 0x2c2   : > { %v682_v57 = vmul.f32 %v681_v55, %v675_v54  ;;  %v698_v58 = vmul.f32 %v697_v56, %v675_v54 }
 0x2c4   : > { %v684_v59 = vsel %vm683_vm7, %v682_v57, 0.0  ;;  %v699_v60 = vsel %vm683_vm7, %v698_v58, 0.0 }
 0x2c5   : > { %v685_v61 = vrot.slane %v684_v59, 4  ;;  %v700_v62 = vrot.slane %v699_v60, 4 }
 0x2c7   : > { %v686_v63 = vadd.f32 %v685_v61, %v684_v59  ;;  %v701_v0 = vadd.f32 %v700_v62, %v699_v60 }
 0x2c9   : > { %v687_v1 = vrot.slane %v686_v63, 2  ;;  %v702_v2 = vrot.slane %v701_v0, 2 }
 0x2cb   : > { %v688_v3 = vadd.f32 %v687_v1, %v686_v63  ;;  %v703_v4 = vadd.f32 %v702_v2, %v701_v0 }
 0x2cd   : > { %v689_v5 = vrot.slane %v688_v3, 1  ;;  %v704_v6 = vrot.slane %v703_v4, 1 }
 0x2cf   : > { %v690_v7 = vadd.f32 %v689_v5, %v688_v3  ;;  %v705_v8 = vadd.f32 %v704_v6, %v703_v4 }
 0x2d1   : > { %v706_v9 = vadd.f32 %v705_v8, %v690_v7 }
 0x2d3   : > { %v707_v10 = vmul.f32 0.03125, %v706_v9 }
 0x2d5   : > { %710 = vperm.xlu0 %990, %v707_v10  }
 0x347   : > { %v711_v11 = vpop.permute.xlu0 %710 }
 0x348   : > { %713 = vst [vmem:[#allocation3] sm:$0xff] %v711_v11 }
 0x349 PF: > { %p1234_p7 = scmp.eq.s32.totalorder %s864_s27, 1  ;;  %s725_s21 = sshll.u32 %s1271_s6, 4  ;;  %s726_s21 = int_to_ptr.hbm [resolvable:$true] %s725_s21 }
 0x34a   : > { %s1090_s22 = smov [#allocation3]   ;;  %s1091_s29 = smov [#allocation5]  }
 0x34b   : > { %s723_s23 = sshll.u32 %s1090_s22, 4  ;;  %s737_s30 = sshll.u32 %s1091_s29, 4  ;;  %s724_s23 = int_to_ptr.vmem [resolvable:$true] %s723_s23  ;;  %s738_s30 = int_to_ptr.vmem [resolvable:$true] %s737_s30 }
 0x34c   : > { %941 = dma.vmem_to_hbm [thread:$0]  (%p1234_p7), %s724_s23, 128, %s726_s21, [#allocation4]  }
 0x34d   : > { %s739_s9 = sshll.u32 %s1272_s7, 4  ;;  %s740_s9 = int_to_ptr.hbm [resolvable:$true] %s739_s9 }
 0x34e   : > { %943 = dma.vmem_to_hbm [thread:$0]  (%p1234_p7), %s738_s30, 128, %s740_s9, [#allocation6]  }
 0x34f   : > { %1066 = dma.done.wait (%p1234_p7), [#allocation4], 128  }
 0x350   : > { %1068 = vsyncadd (%p1234_p7), [#allocation4], 4294967168 }
 0x351   : > { %1070 = dma.done.wait (%p1234_p7), [#allocation6], 128  }
 0x352   : > { %1072 = vsyncadd (%p1234_p7), [#allocation6], 4294967168 }
 0x353 PF: > { %s20_s26 = sadd.s32 1, %s1083_s26   ;;  %s1274_s24 = smov %s1079_s25 }
 0x354   : > { %p17_p8 = scmp.ge.s32.totalorder %s20_s26, 4   ;;  %s1275_s25 = smov %s1277_s28 }
 0x356   :  { %19 = sbr.rel (!%p17_p8) target bundleno = 3 (0x3), region = 101 }
 0x35b   :  { %758 = vsyncpa [#allocation4], 1 }
 0x35c   :  { %760 = vsyncpa [#allocation4 + $0x1], 1 }
 0x35d   :  { %761 = vsyncpa [#allocation6], 1 }

// kernel: tpu_custom_call.1
= control target key start
LH: loop header
LB: loop body
LE: loop exit
PB: predicated region body
PF: predicated region fallthrough
CT: control target
= control target key end

     0   :  { %13 = vsyncpa [#allocation4], 0  ;;  %s1265_s0 = inlined_call_operand.vmem [shape: s32[48,2], index: 0, kind: input, shape index: {}]   ;;  %s1266_s1 = inlined_call_operand.vmem [shape: f32[48,1], index: 1, kind: input, shape index: {}]   ;;  %s1267_s2 = inlined_call_operand.vmem [shape: f32[8,1], index: 2, kind: input, shape index: {}]   ;;  %s1268_s3 = inlined_call_operand.vmem [shape: bf16[32,128], index: 3, kind: input, shape index: {}]   ;;  %s1269_s4 = inlined_call_operand.vmem [shape: f32[8,128], index: 4, kind: input, shape index: {}]   ;;  %s1270_s5 = inlined_call_operand.vmem [shape: bf16[128,128], index: 5, kind: input, shape index: {}]   ;;  %s1271_s6 = inlined_call_operand.hbm [shape: f32[8,128], index: 6, kind: output, shape index: {0}]   ;;  %s1272_s7 = inlined_call_operand.hbm [shape: f32[8,128], index: 7, kind: output, shape index: {1}]  }
   0x1   :  { %14 = vsyncpa [#allocation6], 0  ;;  %s1132_s24 = smov 0   ;;  %s1134_s25 = smov 0  }
   0x2   :  { %s1136_s26 = smov 0  }
   0x3 LB: > { %s864_s27 = sadd.s32 4294967295, %s1083_s26   ;;  %s29_s28 = sadd.s32 1, %s1079_s25  ;;  %s1083_s26 = sphi %s1136_s26, %s20_s26   ;;  %s1079_s25 = sphi %s1134_s25, %s1275_s25   ;;  %s1075_s24 = sphi %s1132_s24, %s1274_s24  }
   0x4   : > { %p30_p0 = scmp.ge.s32.totalorder %s29_s28, 2  ;;  %p871_p1 = scmp.ge.s32.totalorder %s1083_s26, 1 }
   0x5   : > { %p295_p2 = scmp.lt.s32.totalorder %s1083_s26, 3 }
   0x6   : > { %s1277_s28 = smov (%p30_p0, %s29_s28), 0 }
   0x7   : > { %p296_p3 = pnand %p871_p1, %p295_p2 }
   0x8   : > { %s872_s29 = sshll.u32 (!%p296_p3), %s1075_s24, 1  ;;  %p874_p5 = scmp.ne.s32.totalorder (!%p296_p3), %s1075_s24, 0 }
   0x9   : > { %299 = sbr.rel (%p296_p3) target bundleno = 851 (0x353), region = 44  ;;  %p357_p4 = scmp.lt.s32.totalorder (!%p296_p3), %s872_s29, 3 }
   0xe   : > { %s1279_s29 = smov (!%p357_p4, %s872_s29), 3  ;;  %370 = sbr.rel (%p874_p5) target bundleno = 26 (0x1a), region = 48 }
   0xf   : > { %s873_s30 = sshll.u32 %s1279_s29, 2 }
  0x10   : > { %s1157_s10 = scalar_lea.vmem %s1268_s3, %s873_s30 }
  0x13   : > { %v1085_v0 = vmov 0.0  }
  0x14   : > { %371 = vst [vmem:[#allocation2 + $0x28] sm:$0xff] %v1085_v0 }
  0x15   : > { %372 = vst [vmem:[#allocation2 + $0x10] sm:$0xff] %v1085_v0 }
  0x16   : > { %373 = vst [vmem:[#allocation2 + $0x8] sm:$0xff] %v1085_v0 }
  0x17   : > { %374 = vst [vmem:[#allocation2] sm:$0xff] %v1085_v0 }
  0x18   : > { %375 = vst [vmem:[#allocation2 + $0x18] sm:$0xff] %v1085_v0 }
  0x19   : > { %376 = vst [vmem:[#allocation2 + $0x20] sm:$0xff] %v1085_v0 }
  0x1a PF: > { %v386_v1 = vld [vmem:[%s1265_s0 + $0x20] sm:$0xff]  ;;  %v1086_v2 = vmov 1   ;;  %v1087_v3 = vmov 0   ;;  %v387_v5 = vld [vmem:[%s1265_s0 + $0x28] sm:$0xff]  ;;  %v384_v7 = vld [vmem:[%s1265_s0 + $0x10] sm:$0xff]  ;;  %v378_v11 = vlaneseq  ;;  %s875_s23 = sshll.u32 %s1075_s24, 4 }
  0x1b   : > { %984 = vset.pattern.permute.xlu1 %v1086_v2  ;;  %983 = vset.pattern.permute.xlu0 %v1087_v3  ;;  %v382_v4 = vld [vmem:[%s1265_s0] sm:$0xff]  ;;  %v383_v6 = vld [vmem:[%s1265_s0 + $0x8] sm:$0xff]  ;;  %v385_v8 = vld [vmem:[%s1265_s0 + $0x18] sm:$0xff]  ;;  %v380_v13 = vstv %s875_s23  ;;  %v1088_v20 = vmov 0.0   ;;  %vm471_vm6 = vcmask 130048   ;;  %p889_p6 = scmp.ne.s32.totalorder %s1075_s24, 1 }
  0x1c   : > { %425 = vperm.xlu1 %984, %v386_v1   ;;  %401 = vperm.xlu0 %983, %v386_v1   ;;  %v929_v9 = vld [vmem:[%s1157_s10] sm:$0xff]  ;;  %v379_v12 = vand.u32 127, %v378_v11  ;;  %v457_v42 = vld [vmem:[#allocation2 + $0x28] sm:$0xff]  ;;  %v458_v48 = vld [vmem:[#allocation2 + $0x10] sm:$0xff] }
  0x1d   : > { %985 = vset.pattern.permute.xlu2 %v1087_v3  ;;  %939 = vmatpush.bf16.msra.mxu2 %v929_v9  ;;  %v459_v43 = vld [vmem:[#allocation2 + $0x8] sm:$0xff] }
  0x1e   : > { %389 = vperm.xlu2 %985, %v382_v4   ;;  %488 = vmatpush.bf16.msra.mxu0 %v929_v9  ;;  %v381_v16 = vadd.s32 %v380_v13, %v379_v12  ;;  %v460_v49 = vld [vmem:[#allocation2] sm:$0xff] }
  0x1f   : > { %938 = vmatpush.bf16.msra.mxu1 %v929_v9  ;;  %v461_v36 = vld [vmem:[#allocation2 + $0x18] sm:$0xff] }
  0x20   : > { %v462_v39 = vld [vmem:[#allocation2 + $0x20] sm:$0xff] }
  0x24   : > { %428 = vperm.xlu1 %984, %v387_v5   ;;  %404 = vperm.xlu0 %983, %v387_v5  }
  0x26   : > { %392 = vperm.xlu2 %985, %v383_v6  }
  0x2c   : > { %986 = vset.pattern.permute.xlu1 %v1087_v3  ;;  %395 = vperm.xlu0 %983, %v384_v7  }
  0x2d   : > { %398 = vperm.xlu1 %986, %v385_v8  }
  0x2e   : > { %987 = vset.pattern.permute.xlu2 %v1086_v2 }
  0x2f   : > { %413 = vperm.xlu2 %987, %v382_v4  }
  0x34   : > { %988 = vset.pattern.permute.xlu0 %v1086_v2 }
  0x35   : > { %989 = vset.pattern.permute.xlu1 %v1086_v2  ;;  %416 = vperm.xlu0 %988, %v383_v6  }
  0x36   : > { %419 = vperm.xlu1 %989, %v384_v7  }
  0x37   : > { %422 = vperm.xlu2 %987, %v385_v8  }
  0x78   : > { %v390_v10 = vpop.permute.xlu2 %389 }
  0x79   : > { %vm406_vm7 = vcmp.ge.s32.totalorder %v381_v16, %v390_v10 }
  0x80   : > { %v393_v17 = vpop.permute.xlu2 %392 }
  0x81   : > { %vm407_vm12 = vcmp.ge.s32.totalorder %v381_v16, %v393_v17 }
  0x89   : > { %v414_v23 = vpop.permute.xlu2 %413 }
  0x8a   : > { %vm430_vm8 = vcmp.lt.s32.totalorder %v381_v16, %v414_v23 }
  0x8b   : > { %vm436_vm11 = vmand %vm406_vm7, %vm430_vm8 }
  0x8c   : > { %v876_v30 = vsel %vm436_vm11, 1.0, %v1088_v20 }
  0x8e   : > { %v426_v14 = vpop.permute.xlu1 %425  ;;  %v402_v15 = vpop.permute.xlu0 %401 }
  0x8f   : > { %vm434_vm0 = vcmp.lt.s32.totalorder %v381_v16, %v426_v14  ;;  %vm410_vm1 = vcmp.ge.s32.totalorder %v381_v16, %v402_v15 }
  0x90   : > { %vm440_vm2 = vmand %vm410_vm1, %vm434_vm0 }
  0x91   : > { %v880_v21 = vsel %vm440_vm2, 1.0, %v1088_v20  ;;  %v423_v27 = vpop.permute.xlu2 %422 }
  0x92   : > { %vm433_vm10 = vcmp.lt.s32.totalorder %v381_v16, %v423_v27 }
  0x96   : > { %v429_v18 = vpop.permute.xlu1 %428  ;;  %v405_v19 = vpop.permute.xlu0 %404 }
  0x97   : > { %vm435_vm3 = vcmp.lt.s32.totalorder %v381_v16, %v429_v18  ;;  %vm411_vm4 = vcmp.ge.s32.totalorder %v381_v16, %v405_v19 }
  0x98   : > { %vm441_vm5 = vmand %vm411_vm4, %vm435_vm3 }
  0x99   : > { %v881_v22 = vsel %vm441_vm5, 1.0, %v1088_v20 }
  0x9a   : > { %v456_v24 = vpack.c.bf16 %v881_v22, %v880_v21 }
  0x9c   : > { %888 = vmatmul.msk.bf16.vlgmr.msra.gmra.mxu2 %vm471_vm6, %v456_v24 }
  0x9e   : > { %v396_v25 = vpop.permute.xlu0 %395 }
  0x9f   : > { %v399_v26 = vpop.permute.xlu1 %398  ;;  %vm408_vm15 = vcmp.ge.s32.totalorder %v381_v16, %v396_v25 }
  0xa0   : > { %vm409_vm9 = vcmp.ge.s32.totalorder %v381_v16, %v399_v26 }
  0xa1   : > { %vm439_vm13 = vmand %vm409_vm9, %vm433_vm10 }
  0xa2   : > { %v879_v32 = vsel %vm439_vm13, 1.0, %v1088_v20 }
  0xa7   : > { %v417_v28 = vpop.permute.xlu0 %416 }
  0xa8   : > { %vm431_vm14 = vcmp.lt.s32.totalorder %v381_v16, %v417_v28  ;;  %v420_v29 = vpop.permute.xlu1 %419 }
  0xa9   : > { %vm437_vm0 = vmand %vm407_vm12, %vm431_vm14  ;;  %vm432_vm1 = vcmp.lt.s32.totalorder %v381_v16, %v420_v29 }
  0xaa   : > { %v877_v31 = vsel %vm437_vm0, 1.0, %v1088_v20  ;;  %vm438_vm2 = vmand %vm408_vm15, %vm432_vm1 }
  0xab   : > { %v454_v33 = vpack.c.bf16 %v877_v31, %v876_v30  ;;  %v878_v34 = vsel %vm438_vm2, 1.0, %v1088_v20 }
  0xac   : > { %v455_v35 = vpack.c.bf16 %v879_v32, %v878_v34 }
  0xad   : > { %886 = vmatmul.msk.bf16.vlgmr.msra.gmra.mxu0 %vm471_vm6, %v454_v33 }
  0xae   : > { %887 = vmatmul.msk.bf16.vlgmr.msra.gmra.mxu1 %vm471_vm6, %v455_v35 }
 0x11f   : > { %v500_v37 = vpop.f32.mrf.mxu2 }
 0x120   : > { %v509_v38 = vadd.f32 %v500_v37, %v461_v36 }
 0x122   : > { %515 = vst [vmem:[#allocation2 + $0x18] sm:$0xff] %v509_v38 }
 0x127   : > { %v502_v40 = vpop.f32.mrf.mxu2 }
 0x128   : > { %v510_v41 = vadd.f32 %v502_v40, %v462_v39 }
 0x12a   : > { %516 = vst [vmem:[#allocation2 + $0x20] sm:$0xff] %v510_v41  ;;  %v490_v44 = vpop.f32.mrf.mxu0 }
 0x12b   : > { %v505_v45 = vadd.f32 %v490_v44, %v457_v42  ;;  %v495_v46 = vpop.f32.mrf.mxu1 }
 0x12c   : > { %v507_v47 = vadd.f32 %v495_v46, %v459_v43 }
 0x12d   : > { %511 = vst [vmem:[#allocation2 + $0x28] sm:$0xff] %v505_v45 }
 0x12e   : > { %513 = vst [vmem:[#allocation2 + $0x8] sm:$0xff] %v507_v47 }
 0x132   : > { %v492_v50 = vpop.f32.mrf.mxu0  ;;  %520 = sbr.rel (%p889_p6) target bundleno = 841 (0x349), region = 52 }
 0x133   : > { %v506_v51 = vadd.f32 %v492_v50, %v458_v48  ;;  %v497_v52 = vpop.f32.mrf.mxu1 }
 0x134   : > { %v508_v53 = vadd.f32 %v497_v52, %v460_v49 }
 0x135   : > { %512 = vst [vmem:[#allocation2 + $0x10] sm:$0xff] %v506_v51 }
 0x136   : > { %514 = vst [vmem:[#allocation2] sm:$0xff] %v508_v53 }
 0x137   : > { %v529_v54 = vld [vmem:[%s1266_s1 + $0x10] sm:$0xff]  ;;  %v937_v55 = vld [vmem:[%s1270_s5 + $0x38] sm:$0xff]  ;;  %v1089_v56 = vmov 0   ;;  %v935_v58 = vld [vmem:[%s1270_s5 + $0x28] sm:$0xff]  ;;  %vm683_vm7 = vcmask 7168  }
 0x138   : > { %990 = vset.pattern.permute.xlu0 %v1089_v56  ;;  %991 = vset.pattern.permute.xlu1 %v1089_v56  ;;  %v936_v57 = vld [vmem:[%s1270_s5 + $0x30] sm:$0xff]  ;;  %v530_v59 = vld [vmem:[%s1266_s1 + $0x18] sm:$0xff]  ;;  %v934_v60 = vld [vmem:[%s1270_s5 + $0x20] sm:$0xff] }
 0x139   : > { %545 = vperm.xlu0 %990, %v529_v54   ;;  %636 = vmatpush.bf16.msra.mxu0 %v937_v55  ;;  %v933_v61 = vld [vmem:[%s1270_s5 + $0x18] sm:$0xff]  ;;  %v932_v62 = vld [vmem:[%s1270_s5 + $0x10] sm:$0xff]  ;;  %v931_v63 = vld [vmem:[%s1270_s5 + $0x8] sm:$0xff] }
 0x13a   : > { %992 = vset.pattern.permute.xlu2 %v1089_v56  ;;  %v930_v0 = vld [vmem:[%s1270_s5] sm:$0xff]  ;;  %v532_v2 = vld [vmem:[%s1266_s1 + $0x28] sm:$0xff]  ;;  %v525_v18 = vld [vmem:[#allocation2 + $0x18] sm:$0xff] }
 0x13b   : > { %v527_v1 = vld [vmem:[%s1266_s1] sm:$0xff]  ;;  %560 = vperm.xlu2 %992, %v532_v2   ;;  %v528_v4 = vld [vmem:[%s1266_s1 + $0x8] sm:$0xff] }
 0x13c   : > { %535 = vperm.xlu1 %991, %v527_v1   ;;  %v531_v3 = vld [vmem:[%s1266_s1 + $0x20] sm:$0xff]  ;;  %v523_v5 = vld [vmem:[#allocation2 + $0x8] sm:$0xff]  ;;  %v522_v19 = vld [vmem:[#allocation2 + $0x10] sm:$0xff] }
 0x13d   : > { %637 = vmatpush.bf16.msra.mxu0 %v936_v57  ;;  %v569_v9 = vld [vmem:[%s1269_s4] sm:$0xff]  ;;  %v521_v11 = vld [vmem:[#allocation2 + $0x28] sm:$0xff] }
 0x13e   : > { %v526_v13 = vld [vmem:[#allocation2 + $0x20] sm:$0xff] }
 0x13f   : > { %v524_v27 = vld [vmem:[#allocation2] sm:$0xff] }
 0x140   : > { %v674_v51 = vld [vmem:[%s1267_s2] sm:$0xff] }
 0x141   : > { %550 = vperm.xlu0 %990, %v530_v59   ;;  %638 = vmatpush.bf16.msra.mxu0 %v935_v58 }
 0x143   : > { %540 = vperm.xlu2 %992, %v528_v4  }
 0x144   : > { %555 = vperm.xlu1 %991, %v531_v3  }
 0x145   : > { %639 = vmatpush.bf16.msra.mxu0 %v934_v60 }
 0x149   : > { %640 = vmatpush.bf16.msra.mxu0 %v933_v61 }
 0x14d   : > { %641 = vmatpush.bf16.msra.mxu0 %v932_v62 }
 0x151   : > { %642 = vmatpush.bf16.msra.mxu0 %v931_v63 }
 0x155   : > { %643 = vmatpush.bf16.msra.mxu0 %v930_v0 }
 0x195   : > { %v561_v12 = vpop.permute.xlu2 %560 }
 0x196   : > { %v568_v15 = vmul.f32 %v561_v12, %v526_v13 }
 0x19d   : > { %v541_v21 = vpop.permute.xlu2 %540 }
 0x19e   : > { %v564_v23 = vmul.f32 %v541_v21, %v522_v19 }
 0x1ab   : > { %v546_v6 = vpop.permute.xlu0 %545 }
 0x1ac   : > { %v565_v7 = vmul.f32 %v546_v6, %v523_v5 }
 0x1ae   : > { %v571_v8 = vpack.c.bf16 %v565_v7, %v565_v7  ;;  %v536_v10 = vpop.permute.xlu1 %535 }
 0x1af   : > { %v563_v14 = vmul.f32 %v536_v10, %v521_v11 }
 0x1b0   : > { %644 = vmatmul.bf16.vlgmr.msra.gmra.mxu0 %v571_v8 }
 0x1b1   : > { %v570_v16 = vadd.f32 %v569_v9, %v563_v14 }
 0x1b3   : > { %v692_v17 = vmul.f32 %v570_v16, %v568_v15  ;;  %v671_v25 = vmul.f32 %v570_v16, %v564_v23  ;;  %v551_v26 = vpop.permute.xlu0 %550 }
 0x1b4   : > { %v566_v28 = vmul.f32 %v551_v26, %v524_v27 }
 0x1b5   : > { %693 = vadd.xlane.f32.xlu2 %v692_v17 }
 0x1b6   : > { %v556_v20 = vpop.permute.xlu1 %555 }
 0x1b7   : > { %v567_v22 = vmul.f32 %v556_v20, %v525_v18 }
 0x1b9   : > { %v676_v24 = vmul.f32 %v570_v16, %v567_v22 }
 0x1bb   : > { %677 = vadd.xlane.f32.xlu1 %v676_v24 }
 0x1bd   : > { %672 = vadd.xlane.f32.xlu2 %v671_v25 }
 0x228   : > { %v694_v36 = vpop.xlane.xlu2 %693 }
 0x229   : > { %v695_v41 = vadd.f32 1.0, %v694_v36 }
 0x22d   : > { %v645_v29 = vpop.f32.mrf.mxu0 }
 0x22e   : > { %v649_v30 = vmul.f32 %v645_v29, %v566_v28  ;;  %v678_v38 = vpop.xlane.xlu1 %677 }
 0x22f   : > { %v679_v42 = vadd.f32 1.0, %v678_v38 }
 0x230   : > { %650 = vadd.xlane.f32.xlu0 %v649_v30  ;;  %v673_v44 = vpop.xlane.xlu2 %672 }
 0x231   : > { %v680_v48 = vsub.f32 %v679_v42, %v673_v44  ;;  %v696_v49 = vsub.f32 %v695_v41, %v673_v44 }
 0x233   : > { %v681_v55 = vmax.f32 %v680_v48, 0.0  ;;  %v697_v56 = vmax.f32 %v696_v49, 0.0 }
 0x235   : > { %v647_v31 = vpop.f32.mrf.mxu0 }
 0x2a3   : > { %v651_v32 = vpop.xlane.xlu0 %650 }
 0x2a4   : > { %v922_v33 = vmul.f32 -1.442695, %v651_v32 }
 0x2a6   : > { %993 = vpow2.f32 %v922_v33 }
 0x2ac   : > { %v994_v34 = vpop.eup %993 }
 0x2ad   : > { %v655_v35 = vadd.f32 1.0, %v994_v34 }
 0x2af   : > { %995 = vrcp.f32 %v655_v35  ;;  %v667_v43 = vand.u32 2147483648, %v655_v35  ;;  %v665_v46 = vand.u32 2147483647, %v655_v35  ;;  %vm661_vm4 = vweird.f32 %v655_v35 }
 0x2b1   : > { %v668_v50 = vor.u32 1.1754944e-38, %v667_v43  ;;  %vm666_vm6 = vcmp.eq.f32.partialorder %v665_v46, 8.507059e+37 }
 0x2b5   : > { %v996_v37 = vpop.eup %995 }
 0x2b6   : > { %v657_v39 = vmul.f32 %v996_v37, %v655_v35  ;;  %vm662_vm3 = vweird.f32 %v996_v37 }
 0x2b7   : > { %vm663_vm5 = vmor %vm661_vm4, %vm662_vm3 }
 0x2b8   : > { %v658_v40 = vsub.f32 1.0, %v657_v39 }
 0x2ba   : > { %v659_v45 = vmul.f32 %v996_v37, %v658_v40 }
 0x2bc   : > { %v660_v47 = vadd.f32 %v996_v37, %v659_v45 }
 0x2be   : > { %v664_v52 = vsel %vm663_vm5, %v996_v37, %v660_v47 }
 0x2bf   : > { %v669_v53 = vsel %vm666_vm6, %v668_v50, %v664_v52 }
 0x2c0   : > { %v675_v54 = vmul.f32 %v674_v51, %v669_v53  ;;  %714 = vst [vmem:[#allocation5] sm:$0xff] %v669_v53 }
 0x2c2   : > { %v682_v57 = vmul.f32 %v681_v55, %v675_v54  ;;  %v698_v58 = vmul.f32 %v697_v56, %v675_v54 }
 0x2c4   : > { %v684_v59 = vsel %vm683_vm7, %v682_v57, 0.0  ;;  %v699_v60 = vsel %vm683_vm7, %v698_v58, 0.0 }
 0x2c5   : > { %v685_v61 = vrot.slane %v684_v59, 4  ;;  %v700_v62 = vrot.slane %v699_v60, 4 }
 0x2c7   : > { %v686_v63 = vadd.f32 %v685_v61, %v684_v59  ;;  %v701_v0 = vadd.f32 %v700_v62, %v699_v60 }
 0x2c9   : > { %v687_v1 = vrot.slane %v686_v63, 2  ;;  %v702_v2 = vrot.slane %v701_v0, 2 }
 0x2cb   : > { %v688_v3 = vadd.f32 %v687_v1, %v686_v63  ;;  %v703_v4 = vadd.f32 %v702_v2, %v701_v0 }
 0x2cd   : > { %v689_v5 = vrot.slane %v688_v3, 1  ;;  %v704_v6 = vrot.slane %v703_v4, 1 }
 0x2cf   : > { %v690_v7 = vadd.f32 %v689_v5, %v688_v3  ;;  %v705_v8 = vadd.f32 %v704_v6, %v703_v4 }
 0x2d1   : > { %v706_v9 = vadd.f32 %v705_v8, %v690_v7 }
 0x2d3   : > { %v707_v10 = vmul.f32 0.03125, %v706_v9 }
 0x2d5   : > { %710 = vperm.xlu0 %990, %v707_v10  }
 0x347   : > { %v711_v11 = vpop.permute.xlu0 %710 }
 0x348   : > { %713 = vst [vmem:[#allocation3] sm:$0xff] %v711_v11 }
 0x349 PF: > { %p1234_p7 = scmp.eq.s32.totalorder %s864_s27, 1  ;;  %s725_s21 = sshll.u32 %s1271_s6, 4  ;;  %s726_s21 = int_to_ptr.hbm [resolvable:$true] %s725_s21 }
 0x34a   : > { %s1090_s22 = smov [#allocation3]   ;;  %s1091_s29 = smov [#allocation5]  }
 0x34b   : > { %s723_s23 = sshll.u32 %s1090_s22, 4  ;;  %s737_s30 = sshll.u32 %s1091_s29, 4  ;;  %s724_s23 = int_to_ptr.vmem [resolvable:$true] %s723_s23  ;;  %s738_s30 = int_to_ptr.vmem [resolvable:$true] %s737_s30 }
 0x34c   : > { %941 = dma.vmem_to_hbm [thread:$0]  (%p1234_p7), %s724_s23, 128, %s726_s21, [#allocation4]  }
 0x34d   : > { %s739_s9 = sshll.u32 %s1272_s7, 4  ;;  %s740_s9 = int_to_ptr.hbm [resolvable:$true] %s739_s9 }
 0x34e   : > { %943 = dma.vmem_to_hbm [thread:$0]  (%p1234_p7), %s738_s30, 128, %s740_s9, [#allocation6]  }
 0x34f   : > { %1066 = dma.done.wait (%p1234_p7), [#allocation4], 128  }
 0x350   : > { %1068 = vsyncadd (%p1234_p7), [#allocation4], 4294967168 }
 0x351   : > { %1070 = dma.done.wait (%p1234_p7), [#allocation6], 128  }
 0x352   : > { %1072 = vsyncadd (%p1234_p7), [#allocation6], 4294967168 }
 0x353 PF: > { %s20_s26 = sadd.s32 1, %s1083_s26   ;;  %s1274_s24 = smov %s1079_s25 }
 0x354   : > { %p17_p8 = scmp.ge.s32.totalorder %s20_s26, 4   ;;  %s1275_s25 = smov %s1277_s28 }
 0x356   :  { %19 = sbr.rel (!%p17_p8) target bundleno = 3 (0x3), region = 101 }
 0x35b   :  { %758 = vsyncpa [#allocation4], 1 }
 0x35c   :  { %760 = vsyncpa [#allocation4 + $0x1], 1 }
 0x35d   :  { %761 = vsyncpa [#allocation6], 1 }

</bundles_post_ra>
